<compile_context>
chip_gen: v5e
topology: v5e:2x2
jax: 0.10.0
libtpu: 0.0.40
codegen_flags: <defaults>
</compile_context>

<pallas_src>
import math
import jax
import jax.numpy as jnp
from jax.experimental import pallas as pl
from jax.experimental.pallas import tpu as pltpu


# ---------------------------------------------------------------- kernels ---

def matmul_kernel(a_ref, b_ref, o_ref, acc_ref):
    """o = a @ b, tiled over a reduction axis (grid axis 2)."""
    @pl.when(pl.program_id(2) == 0)
    def _():
        acc_ref[...] = jnp.zeros_like(acc_ref)

    acc_ref[...] += jnp.dot(a_ref[...], b_ref[...],
                            preferred_element_type=jnp.float32)

    @pl.when(pl.program_id(2) == pl.num_programs(2) - 1)
    def _():
        o_ref[...] = acc_ref[...].astype(o_ref.dtype)


def agg_bias_relu_kernel(a_ref, z_ref, bias_ref, o_ref, acc_ref):
    """o = relu(Â @ z + bias), tiled over the source-node reduction axis."""
    @pl.when(pl.program_id(2) == 0)
    def _():
        acc_ref[...] = jnp.zeros_like(acc_ref)

    acc_ref[...] += jnp.dot(a_ref[...], z_ref[...],
                            preferred_element_type=jnp.float32)

    @pl.when(pl.program_id(2) == pl.num_programs(2) - 1)
    def _():
        y = acc_ref[...] + bias_ref[...]
        o_ref[...] = jnp.maximum(y, 0.0).astype(o_ref.dtype)


# --------------------------------------------------------------- wrappers ---

def _round_up(n, m):
    return ((n + m - 1) // m) * m


def _pad2d(x, rows, cols):
    r, c = x.shape
    if r == rows and c == cols:
        return x
    return jnp.pad(x, ((0, rows - r), (0, cols - c)))


def _tile(dim_pad, preferred=256):
    # 256-aligned tiles where the (padded) dim allows, else 128.
    return preferred if dim_pad % preferred == 0 else 128


def _tiled_matmul(a, b, out_dtype):
    M, K = a.shape
    _, N = b.shape
    tm, tn, tk = _tile(M), _tile(N), _tile(K)
    return pl.pallas_call(
        matmul_kernel,
        out_shape=jax.ShapeDtypeStruct((M, N), out_dtype),
        grid_spec=pltpu.PrefetchScalarGridSpec(
            num_scalar_prefetch=0,
            grid=(M // tm, N // tn, K // tk),
            in_specs=[pl.BlockSpec((tm, tk), lambda i, j, k: (i, k)),
                      pl.BlockSpec((tk, tn), lambda i, j, k: (k, j))],
            out_specs=pl.BlockSpec((tm, tn), lambda i, j, k: (i, j)),
            scratch_shapes=[pltpu.VMEM((tm, tn), jnp.float32)]),
        compiler_params=pltpu.CompilerParams(
            dimension_semantics=("parallel", "parallel", "arbitrary")),
    )(a, b)


def _tiled_agg_bias_relu(a_hat, z, bias, out_dtype):
    M, K = a_hat.shape            # M = K = padded node count
    _, N = z.shape
    tm, tn, tk = _tile(M), _tile(N), _tile(K)
    return pl.pallas_call(
        agg_bias_relu_kernel,
        out_shape=jax.ShapeDtypeStruct((M, N), out_dtype),
        grid_spec=pltpu.PrefetchScalarGridSpec(
            num_scalar_prefetch=0,
            grid=(M // tm, N // tn, K // tk),
            in_specs=[pl.BlockSpec((tm, tk), lambda i, j, k: (i, k)),
                      pl.BlockSpec((tk, tn), lambda i, j, k: (k, j)),
                      pl.BlockSpec((1, tn), lambda i, j, k: (0, j))],
            out_specs=pl.BlockSpec((tm, tn), lambda i, j, k: (i, j)),
            scratch_shapes=[pltpu.VMEM((tm, tn), jnp.float32)]),
        compiler_params=pltpu.CompilerParams(
            dimension_semantics=("parallel", "parallel", "arbitrary")),
    )(a_hat, z, bias)


def gcn_layer_forward(h, weight, adj, norm, bias):
    """h:(N,F_in) f32, weight:(F_in,F_out), adj:(N,N) A[dst,src], norm:(N,1),
    bias:(1,F_out). Returns relu((norm*A*norm^T) @ (h@W) + bias) as f32."""
    N, F_in = h.shape
    F_out = weight.shape[1]

    # Fold src/dst degree normalizations into the adjacency (done once,
    # outside the kernel): Â[dst,src] = norm[dst] * A[dst,src] * norm[src]
    adj_hat = adj * norm * norm.T

    # Pad everything to lane/sublane-dense, tileable shapes (multiples of 128)
    Np = _round_up(N, 128)
    Fi = _round_up(F_in, 128)
    Fo = _round_up(F_out, 128)

    h_p = _pad2d(h, Np, Fi).astype(jnp.bfloat16)
    w_p = _pad2d(weight, Fi, Fo).astype(jnp.bfloat16)
    a_p = _pad2d(adj_hat, Np, Np).astype(jnp.bfloat16)
    b_p = _pad2d(bias, 1, Fo).astype(jnp.float32)

    # Stage 1: Z = H @ W      (bf16 activations, f32 accumulation)
    z = _tiled_matmul(h_p, w_p, out_dtype=jnp.bfloat16)
    # Stage 2: out = relu(Â @ Z + bias)
    out = _tiled_agg_bias_relu(a_p, z, b_p, out_dtype=jnp.float32)

    return out[:N, :F_out]


# -------------------------------------------------------------- reference ---

def reference_forward_bf16(h, weight, adj, norm, bias):
    """Mimics the kernel's bf16 operands / bf16 Z so the check is tight."""
    hb = h.astype(jnp.bfloat16).astype(jnp.float32)
    wb = weight.astype(jnp.bfloat16).astype(jnp.float32)
    ab = (adj * norm * norm.T).astype(jnp.bfloat16).astype(jnp.float32)
    z = (hb @ wb).astype(jnp.bfloat16).astype(jnp.float32)
    y = ab @ z + bias
    return jnp.maximum(y, 0.0)


def reference_forward_f32(h, weight, adj, norm, bias):
    z = h @ weight
    y = adj @ (z * norm)
    y = y * norm + bias
    return jnp.maximum(y, 0.0)


# ------------------------------------------------------------------- main ---

if __name__ == "__main__":
    key = jax.random.PRNGKey(0)
    k_h, k_w, k_b = jax.random.split(key, 3)

    N = 8          # number of graph nodes
    in_feats = 32
    out_feats = 32

    # Parameter init matching PyTorch reset_parameters:
    # uniform(-stdv, stdv) with stdv = 1/sqrt(out_feats)
    stdv = 1.0 / math.sqrt(out_feats)
    weight = jax.random.uniform(k_w, (in_feats, out_feats),
                                minval=-stdv, maxval=stdv, dtype=jnp.float32)
    bias = jax.random.uniform(k_b, (1, out_feats),
                              minval=-stdv, maxval=stdv, dtype=jnp.float32)

    # Deterministic small graph: ring edges (both directions) + self loops.
    # A[dst, src] = 1 for edge src -> dst.
    idx = jnp.arange(N)
    adj = jnp.zeros((N, N), dtype=jnp.float32)
    adj = adj.at[idx, idx].set(1.0)
    adj = adj.at[idx, (idx + 1) % N].set(1.0)
    adj = adj.at[idx, (idx - 1) % N].set(1.0)

    # norm = in_degree^{-1/2}, shape (N, 1)
    deg = adj.sum(axis=1, keepdims=True)
    norm = 1.0 / jnp.sqrt(deg)

    # Node features
    h = jax.random.normal(k_h, (N, in_feats), dtype=jnp.float32)

    out = gcn_layer_forward(h, weight, adj, norm, bias)
    out = jax.block_until_ready(out)
    assert out.shape == (N, out_feats)

    # Tight check vs a reference that uses the same bf16 operands / bf16 Z.
    ref_bf16 = reference_forward_bf16(h, weight, adj, norm, bias)
    assert jnp.allclose(out, ref_bf16, atol=1e-3, rtol=1e-3), \
        "mismatch vs bf16-matched reference"

    # Loose sanity check vs full-f32 math (bf16 rounding tolerance).
    ref_f32 = reference_forward_f32(h, weight, adj, norm, bias)
    assert jnp.allclose(out, ref_f32, atol=5e-2, rtol=5e-2), \
        "mismatch vs f32 reference"

    print("KERNEL_OK")
</pallas_src>

<mosaic_0001>
module attributes {stable_mosaic.version = 11 : i64} {
  func.func @matmul_kernel(%arg0: i32, %arg1: i32, %arg2: i32, %arg3: memref<128x128xbf16, #tpu.memory_space<vmem>>, %arg4: memref<128x128xbf16, #tpu.memory_space<vmem>>, %arg5: memref<128x128xbf16, #tpu.memory_space<vmem>>, %arg6: memref<128x128xf32, #tpu.memory_space<vmem>>) attributes {dimension_semantics = [#tpu.dimension_semantics<parallel>, #tpu.dimension_semantics<parallel>, #tpu.dimension_semantics<arbitrary>], iteration_bounds = array<i64: 1, 1, 1>, scalar_prefetch = 0 : i64, scratch_operands = 1 : i64, tpu.core_type = #tpu.core_type<tc>, window_params = [{transform_indices = @transform_0, window_bounds = array<i64: 128, 128>}, {transform_indices = @transform_1, window_bounds = array<i64: 128, 128>}, {transform_indices = @transform_2, window_bounds = array<i64: 128, 128>}]} {
    %c0_i32 = arith.constant 0 : i32
    %0 = arith.cmpi eq, %arg2, %c0_i32 : i32
    %1 = arith.extui %0 : i1 to i32
    %c0_i32_0 = arith.constant 0 : i32
    %2 = arith.cmpi ne, %1, %c0_i32_0 : i32
    scf.if %2 {
      %cst_10 = arith.constant 0.000000e+00 : f32
      %12 = vector.broadcast %cst_10 : f32 to vector<128x128xf32>
      %c0_11 = arith.constant 0 : index
      %c0_12 = arith.constant 0 : index
      %13 = vector.load %arg6[%c0_11, %c0_12] : memref<128x128xf32, #tpu.memory_space<vmem>>, vector<128x128xf32>
      tpu.vector_store %arg6[%c0_11, %c0_12], %12 {strides = array<i32>} : memref<128x128xf32, #tpu.memory_space<vmem>>, vector<128x128xf32>,
    } else {
    }
    %c0 = arith.constant 0 : index
    %c0_1 = arith.constant 0 : index
    %3 = vector.load %arg6[%c0, %c0_1] : memref<128x128xf32, #tpu.memory_space<vmem>>, vector<128x128xf32>
    %c0_2 = arith.constant 0 : index
    %c0_3 = arith.constant 0 : index
    %4 = vector.load %arg3[%c0_2, %c0_3] : memref<128x128xbf16, #tpu.memory_space<vmem>>, vector<128x128xbf16>
    %c0_4 = arith.constant 0 : index
    %c0_5 = arith.constant 0 : index
    %5 = vector.load %arg4[%c0_4, %c0_5] : memref<128x128xbf16, #tpu.memory_space<vmem>>, vector<128x128xbf16>
    %cst = arith.constant dense<0.000000e+00> : vector<128x128xf32>
    %6 = tpu.matmul %4, %5, %cst {dimension_numbers = #tpu.dot_dimension_numbers<[1], [0], [0], [1], [0, 0, 1, 1], [], []>} : vector<128x128xbf16>, vector<128x128xbf16>, vector<128x128xf32> -> vector<128x128xf32>
    %7 = arith.addf %3, %6 : vector<128x128xf32>
    %c0_6 = arith.constant 0 : index
    %c0_7 = arith.constant 0 : index
    %8 = vector.load %arg6[%c0_6, %c0_7] : memref<128x128xf32, #tpu.memory_space<vmem>>, vector<128x128xf32>
    tpu.vector_store %arg6[%c0_6, %c0_7], %7 {strides = array<i32>} : memref<128x128xf32, #tpu.memory_space<vmem>>, vector<128x128xf32>,
    %c0_i32_8 = arith.constant 0 : i32
    %9 = arith.cmpi eq, %arg2, %c0_i32_8 : i32
    %10 = arith.extui %9 : i1 to i32
    %c0_i32_9 = arith.constant 0 : i32
    %11 = arith.cmpi ne, %10, %c0_i32_9 : i32
    scf.if %11 {
      %c0_10 = arith.constant 0 : index
      %c0_11 = arith.constant 0 : index
      %12 = vector.load %arg6[%c0_10, %c0_11] : memref<128x128xf32, #tpu.memory_space<vmem>>, vector<128x128xf32>
      %13 = arith.truncf %12 : vector<128x128xf32> to vector<128x128xbf16>
      %c0_12 = arith.constant 0 : index
      %c0_13 = arith.constant 0 : index
      %14 = vector.load %arg5[%c0_12, %c0_13] : memref<128x128xbf16, #tpu.memory_space<vmem>>, vector<128x128xbf16>
      tpu.vector_store %arg5[%c0_12, %c0_13], %13 {strides = array<i32>} : memref<128x128xbf16, #tpu.memory_space<vmem>>, vector<128x128xbf16>,
    } else {
    }
    return
  }
  func.func @transform_0(%arg0: i32, %arg1: i32, %arg2: i32) -> (i32, i32) {
    %c0_i32 = arith.constant 0 : i32
    return %arg0, %arg2 : i32, i32
  }
  func.func @transform_1(%arg0: i32, %arg1: i32, %arg2: i32) -> (i32, i32) {
    %c0_i32 = arith.constant 0 : i32
    return %arg2, %arg1 : i32, i32
  }
  func.func @transform_2(%arg0: i32, %arg1: i32, %arg2: i32) -> (i32, i32) {
    %c0_i32 = arith.constant 0 : i32
    return %arg0, %arg1 : i32, i32
  }
}

</mosaic_0001>

<bundles_post_ra>
// kernel: tpu_custom_call.1
= control target key start
LH: loop header
LB: loop body
LE: loop exit
PB: predicated region body
PF: predicated region fallthrough
CT: control target
= control target key end

     0   :  { %7 = vsyncpa [#allocation4], 0  ;;  %s632_s0 = inlined_call_operand.hbm [shape: bf16[128,128], index: 0, kind: input, shape index: {}]   ;;  %s633_s1 = inlined_call_operand.hbm [shape: bf16[128,128], index: 1, kind: input, shape index: {}]   ;;  %s634_s2 = inlined_call_operand.hbm [shape: bf16[128,128], index: 2, kind: output, shape index: {}]  }
   0x1   :  { %8 = vsyncpa [#allocation7], 0 }
   0x2   :  { %9 = vsyncpa [#allocation5], 0  ;;  %s14_s11 = sshll.u32 %s632_s0, 4  ;;  %s594_s12 = smov [#allocation3]   ;;  %s15_s11 = int_to_ptr.hbm [resolvable:$true] %s14_s11 }
   0x3   :  { %s16_s13 = sshll.u32 %s594_s12, 4  ;;  %s27_s16 = sshll.u32 %s633_s1, 4  ;;  %s17_s13 = int_to_ptr.vmem [resolvable:$true] %s16_s13  ;;  %s28_s16 = int_to_ptr.hbm [resolvable:$true] %s27_s16 }
   0x4   :  { %s595_s17 = smov 64   ;;  %s596_s18 = smov 4  }
   0x5   :  { %22 = dma.hbm_to_vmem [thread:$0]  %s15_s11, 1024, %s17_s13, [#allocation4], %s595_s17, %s595_s17, %s596_s18  }
   0x6   :  { %s597_s19 = smov [#allocation6]  }
   0x7   :  { %s29_s20 = sshll.u32 %s597_s19, 4  ;;  %s30_s20 = int_to_ptr.vmem [resolvable:$true] %s29_s20 }
   0x8   :  { %35 = dma.hbm_to_vmem [thread:$0]  %s28_s16, 1024, %s30_s20, [#allocation7], %s595_s17, %s595_s17, %s596_s18  }
   0x9   :  { %588 = dma.done.wait [#allocation4], 1024  }
   0xa   :  { %589 = vsyncadd [#allocation4], 4294966272 }
   0xb   :  { %590 = dma.done.wait [#allocation7], 1024  }
   0xc   :  { %591 = vsyncadd [#allocation7], 4294966272  ;;  %v439_v0 = vld [vmem:[#allocation6 + $0x38] sm:$0xff]  ;;  %v438_v1 = vld [vmem:[#allocation6 + $0x30] sm:$0xff]  ;;  %s598_s0 = smov [#allocation8]   ;;  %s346_s23 = sshll.u32 %s634_s2, 4  ;;  %s347_s23 = int_to_ptr.hbm [resolvable:$true] %s346_s23 }
   0xd   :  { %208 = vmatpush.bf16.msra.mxu0 %v439_v0  ;;  %487 = vmatpush.bf16.msra.mxu1 %v439_v0  ;;  %v437_v2 = vld [vmem:[#allocation6 + $0x28] sm:$0xff]  ;;  %v436_v3 = vld [vmem:[#allocation6 + $0x20] sm:$0xff]  ;;  %v435_v4 = vld [vmem:[#allocation6 + $0x18] sm:$0xff]  ;;  %s344_s1 = sshll.u32 %s598_s0, 4  ;;  %s345_s1 = int_to_ptr.vmem [resolvable:$true] %s344_s1 }
   0xe   :  { %488 = vmatpush.bf16.msra.mxu2 %v439_v0  ;;  %489 = vmatpush.bf16.msra.mxu3 %v439_v0  ;;  %v434_v5 = vld [vmem:[#allocation6 + $0x10] sm:$0xff]  ;;  %v433_v6 = vld [vmem:[#allocation6 + $0x8] sm:$0xff]  ;;  %v432_v7 = vld [vmem:[#allocation6] sm:$0xff] }
   0xf   :  { %v424_v8 = vld [vmem:[#allocation3] sm:$0xff]  ;;  %v426_v9 = vld [vmem:[#allocation3 + $0x10] sm:$0xff]  ;;  %v425_v12 = vld [vmem:[#allocation3 + $0x8] sm:$0xff] }
  0x10   :  { %v428_v10 = vld [vmem:[#allocation3 + $0x20] sm:$0xff]  ;;  %v430_v11 = vld [vmem:[#allocation3 + $0x30] sm:$0xff]  ;;  %v427_v13 = vld [vmem:[#allocation3 + $0x18] sm:$0xff] }
  0x11   :  { %209 = vmatpush.bf16.msra.mxu0 %v438_v1  ;;  %490 = vmatpush.bf16.msra.mxu1 %v438_v1  ;;  %v429_v14 = vld [vmem:[#allocation3 + $0x28] sm:$0xff]  ;;  %v431_v15 = vld [vmem:[#allocation3 + $0x38] sm:$0xff] }
  0x12   :  { %491 = vmatpush.bf16.msra.mxu2 %v438_v1  ;;  %492 = vmatpush.bf16.msra.mxu3 %v438_v1 }
  0x15   :  { %210 = vmatpush.bf16.msra.mxu0 %v437_v2  ;;  %493 = vmatpush.bf16.msra.mxu1 %v437_v2 }
  0x16   :  { %494 = vmatpush.bf16.msra.mxu2 %v437_v2  ;;  %495 = vmatpush.bf16.msra.mxu3 %v437_v2 }
  0x19   :  { %211 = vmatpush.bf16.msra.mxu0 %v436_v3  ;;  %496 = vmatpush.bf16.msra.mxu1 %v436_v3 }
  0x1a   :  { %497 = vmatpush.bf16.msra.mxu2 %v436_v3  ;;  %498 = vmatpush.bf16.msra.mxu3 %v436_v3 }
  0x1d   :  { %212 = vmatpush.bf16.msra.mxu0 %v435_v4  ;;  %499 = vmatpush.bf16.msra.mxu1 %v435_v4 }
  0x1e   :  { %500 = vmatpush.bf16.msra.mxu2 %v435_v4  ;;  %501 = vmatpush.bf16.msra.mxu3 %v435_v4 }
  0x21   :  { %213 = vmatpush.bf16.msra.mxu0 %v434_v5  ;;  %502 = vmatpush.bf16.msra.mxu1 %v434_v5 }
  0x22   :  { %503 = vmatpush.bf16.msra.mxu2 %v434_v5  ;;  %504 = vmatpush.bf16.msra.mxu3 %v434_v5 }
  0x25   :  { %214 = vmatpush.bf16.msra.mxu0 %v433_v6  ;;  %505 = vmatpush.bf16.msra.mxu1 %v433_v6 }
  0x26   :  { %506 = vmatpush.bf16.msra.mxu2 %v433_v6  ;;  %507 = vmatpush.bf16.msra.mxu3 %v433_v6 }
  0x29   :  { %215 = vmatpush.bf16.msra.mxu0 %v432_v7  ;;  %508 = vmatpush.bf16.msra.mxu1 %v432_v7 }
  0x2a   :  { %509 = vmatpush.bf16.msra.mxu2 %v432_v7  ;;  %510 = vmatpush.bf16.msra.mxu3 %v432_v7 }
  0x2c   :  { %216 = vmatmul.bf16.vlgmr.msra.gmra.mxu0 %v424_v8  ;;  %226 = vmatmul.bf16.vlgmr.msra.gmra.mxu1 %v426_v9 }
  0x2d   :  { %236 = vmatmul.bf16.vlgmr.msra.gmra.mxu2 %v428_v10  ;;  %246 = vmatmul.bf16.vlgmr.msra.gmra.mxu3 %v430_v11 }
  0x3c   :  { %221 = vmatmul.bf16.gmra.mxu0 %v425_v12  ;;  %231 = vmatmul.bf16.gmra.mxu1 %v427_v13 }
  0x3d   :  { %241 = vmatmul.bf16.gmra.mxu2 %v429_v14  ;;  %251 = vmatmul.bf16.gmra.mxu3 %v431_v15 }
  0xa9   :  { %v217_v16 = vpop.f32.mrf.mxu0  ;;  %v227_v17 = vpop.f32.mrf.mxu1 }
  0xb0   :  { %v237_v18 = vpop.f32.mrf.mxu2  ;;  %v247_v19 = vpop.f32.mrf.mxu3 }
  0xb1   :  { %v219_v20 = vpop.f32.mrf.mxu0  ;;  %v229_v21 = vpop.f32.mrf.mxu1 }
  0xb2   :  { %v443_v22 = vpack.c.bf16 %v219_v20, %v217_v16  ;;  %v453_v23 = vpack.c.bf16 %v229_v21, %v227_v17 }
  0xb4   :  { %444 = vst [vmem:[#allocation8] sm:$0xff] %v443_v22  }
  0xb5   :  { %481 = vst [vmem:[#allocation8 + $0x10] sm:$0xff] %v453_v23  }
  0xb8   :  { %v239_v24 = vpop.f32.mrf.mxu2  ;;  %v249_v25 = vpop.f32.mrf.mxu3 }
  0xb9   :  { %v463_v26 = vpack.c.bf16 %v239_v24, %v237_v18  ;;  %v473_v27 = vpack.c.bf16 %v249_v25, %v247_v19  ;;  %v222_v28 = vpop.f32.mrf.mxu0  ;;  %v232_v29 = vpop.f32.mrf.mxu1 }
  0xbb   :  { %483 = vst [vmem:[#allocation8 + $0x20] sm:$0xff] %v463_v26  }
  0xbc   :  { %485 = vst [vmem:[#allocation8 + $0x30] sm:$0xff] %v473_v27  }
  0xc0   :  { %v242_v30 = vpop.f32.mrf.mxu2  ;;  %v252_v31 = vpop.f32.mrf.mxu3 }
  0xc1   :  { %v224_v32 = vpop.f32.mrf.mxu0  ;;  %v234_v33 = vpop.f32.mrf.mxu1 }
  0xc2   :  { %v448_v34 = vpack.c.bf16 %v224_v32, %v222_v28  ;;  %v458_v35 = vpack.c.bf16 %v234_v33, %v232_v29 }
  0xc4   :  { %480 = vst [vmem:[#allocation8 + $0x8] sm:$0xff] %v448_v34  }
  0xc5   :  { %482 = vst [vmem:[#allocation8 + $0x18] sm:$0xff] %v458_v35  }
  0xc8   :  { %v244_v36 = vpop.f32.mrf.mxu2  ;;  %v254_v37 = vpop.f32.mrf.mxu3 }
  0xc9   :  { %v468_v38 = vpack.c.bf16 %v244_v36, %v242_v30  ;;  %v478_v39 = vpack.c.bf16 %v254_v37, %v252_v31 }
  0xcb   :  { %484 = vst [vmem:[#allocation8 + $0x28] sm:$0xff] %v468_v38  }
  0xcc   :  { %486 = vst [vmem:[#allocation8 + $0x38] sm:$0xff] %v478_v39  }
  0xcd   :  { %352 = dma.vmem_to_hbm [thread:$0]  %s345_s1, 1024, %s347_s23, [#allocation5], %s595_s17, %s595_s17, %s596_s18  }
  0xce   :  { %592 = dma.done.wait [#allocation5], 1024  }
  0xcf   :  { %593 = vsyncadd [#allocation5], 4294966272 }
  0xd0   :  { %357 = vsyncpa [#allocation4], 1 }
  0xd1   :  { %358 = vsyncpa [#allocation7], 1 }
  0xd2   :  { %359 = vsyncpa [#allocation5], 1 }

</bundles_post_ra>
